<compile_context>
chip_gen: v7x
topology: tpu7x:2x2x1
jax: 0.10.0
libtpu: 0.0.40
codegen_flags: <defaults>
</compile_context>

<pallas_src>
import functools
import math

import jax
import jax.numpy as jnp
from jax.experimental import pallas as pl
from jax.experimental.pallas import tpu as pltpu

_LANES = 128  # TPU vreg lane width: keep the fast axis exactly lane-dense.


def _round_up(n, m):
    return ((n + m - 1) // m) * m


def _binarize_kernel(seed_ref, x_ref, o_ref, *, training):
    """(Stochastic) binarization on one (TILE_R, 128) block.

    seed_ref: (1,) int32 scalar-prefetch (SMEM) -- PRNG seed (used only if training)
    x_ref:    (TILE_R, 128) logits block (VMEM)
    o_ref:    (TILE_R, 128) output block (VMEM), same dtype as input
    """
    x = x_ref[...]

    if training:
        # sigmoid in f32 (v5e VPU/EUP have no bf16); exp rides the EUP slot.
        prob = 1.0 / (1.0 + jnp.exp(-x.astype(jnp.float32)))

        # --- counter-based uniform RNG (portable: no pltpu.prng_* primitives) ---
        tile_rows = x_ref.shape[0]
        row = jax.lax.broadcasted_iota(jnp.int32, x.shape, 0)
        col = jax.lax.broadcasted_iota(jnp.int32, x.shape, 1)
        base = pl.program_id(0) * (tile_rows * _LANES)
        idx = (base + row * _LANES + col).astype(jnp.uint32)

        # Mix the seed with a golden-ratio multiplier so (seed k, block b) never
        # collides with (seed k+1, block b-1), then run the lowbias32 avalanche.
        seed_mix = seed_ref[0].astype(jnp.uint32) * jnp.uint32(0x9E3779B9)
        h = idx ^ seed_mix
        h = h ^ (h >> jnp.uint32(16))
        h = h * jnp.uint32(0x7FEB352D)
        h = h ^ (h >> jnp.uint32(15))
        h = h * jnp.uint32(0x846CA68B)
        h = h ^ (h >> jnp.uint32(16))

        # Uniform in [0, 1) from the top 24 bits (safe uint32->int32->f32 convert).
        u = (h >> jnp.uint32(8)).astype(jnp.int32).astype(jnp.float32) * (
            1.0 / float(1 << 24))
        binary = prob > u
    else:
        # sigmoid(x) > 0.5  <=>  x > 0 : exact, no exp / divide on the eval path.
        binary = x > 0

    # Forward value of `binary + (prob - prob.detach())` is exactly `binary`.
    o_ref[...] = binary.astype(o_ref.dtype)


def stochastic_binarization(logits, *, training=False, seed=0, max_tile_rows=2048):
    """Forward pass of StochasticBinarizationLayer. Works for any logits shape."""
    orig_shape = logits.shape
    total = math.prod(orig_shape)
    out_dtype = logits.dtype  # result values are exactly {0, 1}

    rows = max(pl.cdiv(total, _LANES), 1)
    pad = rows * _LANES - total

    # Lane-dense (rows, 128) view. Only pad when strictly necessary (tail < 128).
    if pad == 0:
        x2d = logits.reshape(rows, _LANES)
    else:
        x2d = jnp.pad(jnp.ravel(logits), (0, pad)).reshape(rows, _LANES)

    # Tile rows: big 8-aligned blocks; keep >= 2 grid steps when there is enough
    # work so v7x's two TensorCores both stay busy (no-op on v5e/v6e).
    if rows >= 16:
        tile_rows = min(max_tile_rows, _round_up(pl.cdiv(rows, 2), 8))
    else:
        tile_rows = _round_up(rows, 8)
    grid = pl.cdiv(rows, tile_rows)  # Pallas masks a partial last block

    seed_arr = jnp.asarray([seed], dtype=jnp.int32)
    kernel = functools.partial(_binarize_kernel, training=training)

    out2d = pl.pallas_call(
        kernel,
        out_shape=jax.ShapeDtypeStruct((rows, _LANES), out_dtype),
        grid_spec=pltpu.PrefetchScalarGridSpec(
            num_scalar_prefetch=1,                       # seed lands in SMEM
            grid=(grid,),
            in_specs=[pl.BlockSpec((tile_rows, _LANES), lambda i, seed: (i, 0))],
            out_specs=pl.BlockSpec((tile_rows, _LANES), lambda i, seed: (i, 0)),
        ),
        compiler_params=pltpu.CompilerParams(
            dimension_semantics=("parallel",)),          # shards over 2 TCs on v7x
    )(seed_arr, x2d)

    if pad == 0:
        return out2d.reshape(orig_shape)
    return out2d.reshape(-1)[:total].reshape(orig_shape)


if __name__ == "__main__":
    # Small logits tensor consistent with the module (shape-agnostic elementwise op).
    N, C, H, W = 2, 4, 16, 16
    key = jax.random.PRNGKey(0)
    logits = jax.random.normal(key, (N, C, H, W), dtype=jnp.float32)

    # --- Eval mode (deterministic): bit-exact vs the mathematical reference. ------
    out_eval = jax.block_until_ready(stochastic_binarization(logits, training=False))
    ref_eval = (logits > 0).astype(jnp.float32)   # == (sigmoid(logits) > 0.5)
    assert out_eval.shape == logits.shape
    assert out_eval.dtype == jnp.float32
    assert bool(jnp.all(out_eval == ref_eval)), "eval-mode mismatch vs reference"

    # --- Training mode (stochastic): values exactly {0,1}, mean sane, repeatable. -
    out_train = jax.block_until_ready(
        stochastic_binarization(logits, training=True, seed=1234))
    assert out_train.shape == logits.shape
    assert bool(jnp.all((out_train == 0.0) | (out_train == 1.0)))
    p_mean = float(jnp.mean(1.0 / (1.0 + jnp.exp(-logits))))
    b_mean = float(jnp.mean(out_train))
    assert abs(p_mean - b_mean) < 0.1, (p_mean, b_mean)

    out_train2 = jax.block_until_ready(
        stochastic_binarization(logits, training=True, seed=1234))
    assert bool(jnp.all(out_train == out_train2)), "same seed must be deterministic"

    print("KERNEL_OK")
</pallas_src>

<mosaic_0001>
module attributes {stable_mosaic.version = 11 : i64} {
  func.func @_binarize_kernel(%arg0: i32, %arg1: memref<1xi32, #tpu.memory_space<smem>>, %arg2: memref<8x128xf32, #tpu.memory_space<vmem>>, %arg3: memref<8x128xf32, #tpu.memory_space<vmem>>) attributes {dimension_semantics = [#tpu.dimension_semantics<parallel>], iteration_bounds = array<i64: 2>, scalar_prefetch = 1 : i64, scratch_operands = 0 : i64, tpu.core_type = #tpu.core_type<tc>, window_params = [{transform_indices = @transform_0, window_bounds = array<i64: 8, 128>}, {transform_indices = @transform_1, window_bounds = array<i64: 8, 128>}]} {
    %c0 = arith.constant 0 : index
    %c0_0 = arith.constant 0 : index
    %0 = vector.load %arg2[%c0, %c0_0] : memref<8x128xf32, #tpu.memory_space<vmem>>, vector<8x128xf32>
    %cst = arith.constant 0.000000e+00 : f32
    %1 = vector.broadcast %cst : f32 to vector<8x128xf32>
    %2 = arith.cmpf ogt, %0, %1 : vector<8x128xf32>
    %3 = arith.extui %2 : vector<8x128xi1> to vector<8x128xi32>
    %4 = arith.sitofp %3 : vector<8x128xi32> to vector<8x128xf32>
    %c0_1 = arith.constant 0 : index
    %c0_2 = arith.constant 0 : index
    %5 = vector.load %arg3[%c0_1, %c0_2] : memref<8x128xf32, #tpu.memory_space<vmem>>, vector<8x128xf32>
    tpu.vector_store %arg3[%c0_1, %c0_2], %4 {strides = array<i32>} : memref<8x128xf32, #tpu.memory_space<vmem>>, vector<8x128xf32>,
    return
  }
  func.func @transform_0(%arg0: i32, %arg1: memref<1xi32, #tpu.memory_space<smem>>) -> (i32, i32) {
    %c0_i32 = arith.constant 0 : i32
    %c0_i32_0 = arith.constant 0 : i32
    return %arg0, %c0_i32 : i32, i32
  }
  func.func @transform_1(%arg0: i32, %arg1: memref<1xi32, #tpu.memory_space<smem>>) -> (i32, i32) {
    %c0_i32 = arith.constant 0 : i32
    %c0_i32_0 = arith.constant 0 : i32
    return %arg0, %c0_i32 : i32, i32
  }
}

</mosaic_0001>

<bundles_post_ra>
// kernel: tpu_custom_call.1
= control target key start
LH: loop header
LB: loop body
LE: loop exit
PB: predicated region body
PF: predicated region fallthrough
CT: control target
= control target key end

     0   :  { %8 = vsyncpa [#allocation5], 0  ;;  %s560_s0 = inlined_call_operand.<no memory space> [shape: s32[1], index: 0, kind: input, shape index: {}]   ;;  %s561_s1 = inlined_call_operand.hbm [shape: f32[16,128], index: 1, kind: input, shape index: {}]   ;;  %s562_s2 = inlined_call_operand.hbm [shape: f32[16,128], index: 2, kind: output, shape index: {}]  }
   0x1   :  { %10 = vsyncpa [#allocation5 + $0x1], 0 }
   0x2   :  { %11 = vsyncpa [#allocation6], 0 }
   0x3   :  { %13 = vsyncpa [#allocation6 + $0x1], 0  ;;  %s399_s9 = smov 0   ;;  %s401_s10 = smov 0  }
   0x4   :  { %s403_s11 = smov 0   ;;  %s405_s12 = smov 0  }
   0x5 LB: > { %s420_s0 = sadd.s32 4294967295, %s379_s12   ;;  %s223_s13 = sadd.s32 4294967294, %s379_s12   ;;  %s379_s12 = sphi %s405_s12, %s577_s12   ;;  %s375_s11 = sphi %s403_s11, %s576_s11   ;;  %s371_s10 = sphi %s401_s10, %s575_s10   ;;  %s367_s9 = sphi %s399_s9, %s574_s9  }
   0x6   : > { %s424_s14 = sadd.s32 1, %s379_s12   ;;  %s26_s15 = sadd.s32 1, %s375_s11 }
   0x7   : > { %s23_s16 = ssub.s32 %s379_s12, %s424_s14  ;;  %p33_p0 = scmp.ne.s32.totalorder %s375_s11, %s371_s10 }
   0x8   : > { %p24_p1 = scmp.eq.s32.totalorder %s23_s16, 0  ;;  %p34_p2 = scmp.eq.s32.totalorder %s379_s12, 0 }
   0x9   : > { %p39_p3 = scmp.ne.s32.totalorder %s371_s10, %s367_s9  ;;  %p40_p4 = scmp.eq.s32.totalorder %s420_s0, 0 }
   0xa   : > { %s436_s17 = scalar_select %p24_p1, %s375_s11, %s26_s15  }
   0xb   : > { %p438_p5 = por %p34_p2, %p33_p0  ;;  %p442_p6 = por %p40_p4, %p39_p3 }
   0xc   : > { %p63_p7 = scmp.eq.s32.totalorder %s420_s0, 1  ;;  %p69_p8 = scmp.eq.s32.totalorder %s223_s13, 1 }
   0xd   : > { %p248_p10 = scmp.lt.s32.totalorder %s379_s12, 2  ;;  %s89_s22 = sand.u32 1, %s375_s11  }
   0xe   : > { %p449_p11 = por %p63_p7, %p33_p0  ;;  %p453_p12 = por %p69_p8, %p39_p3 }
   0xf   : > { %s227_s23 = sshll.u32 %s379_s12, 7  ;;  %s226_s24 = sshll.u32 %s89_s22, 3 }
  0x10   : > { %s566_s20 = scalar_select %p449_p11, 1, 0 }
  0x11   : > { %s567_s21 = scalar_select %p453_p12, 1, 0 }
  0x12   : > { %s462_s27 = scalar_lea.hbm %s561_s1, %s227_s23  ;;  %s93_s28 = scalar_lea.vmem [#allocation4], %s226_s24 }
  0x13   : > { %s100_s29 = sshll.u32 %s93_s28, 4  ;;  %p466_p13 = pnand %p248_p10, %p438_p5  ;;  %s470_s29 = int_to_ptr.vmem [resolvable:$true] %s100_s29 }
  0x14   : > { %s90_s3 = scalar_lea.sflag [#allocation5], %s89_s22  ;;  %s283_s4 = scalar_lea.hbm %s462_s27, 128 }
  0x15   : > { %p284_p2 = scmp.ne.s32.totalorder %s462_s27, %s283_s4  ;;  %p285_p3 = pneg %p466_p13 }
  0x16   : > { %s288_s7 = scalar_lea.hbm %s561_s1, 256  ;;  %p289_p5 = scmp.lt.u32.totalorder %s462_s27, %s561_s1 }
  0x17   : > { %p286_p4 = pnand %p285_p3, %p284_p2  ;;  %p290_p8 = scmp.lt.u32.totalorder %s288_s7, %s283_s4 }
  0x18   : > { %p292_p9 = scmp.lt.u32.totalorder %s283_s4, %s462_s27 }
  0x19   : > { %p287_p7 = pneg %p286_p4  ;;  %p291_p10 = por %p290_p8, %p289_p5 }
  0x1b   : > { %p293_p0 = por %p292_p9, %p291_p10 }
  0x1d   : > { %p294_p1 = pnand %p293_p0, %p287_p7 }
  0x1f   : > { %297 = shalt.err (!%p294_p1)
}
  0x20   : > { %s298_s15 = scalar_lea.vmem %s470_s29, 128  ;;  %s381_s16 = smov [#allocation4]  }
  0x21   : > { %p299_p2 = scmp.ne.s32.totalorder %s470_s29, %s298_s15  ;;  %s303_s18 = sshll.u32 %s381_s16, 4  ;;  %s304_s18 = int_to_ptr.vmem [resolvable:$false] %s303_s18 }
  0x22   : > { %s305_s22 = scalar_lea.vmem %s304_s18, 256  ;;  %p306_p11 = scmp.lt.s32.totalorder %s470_s29, %s304_s18 }
  0x23   : > { %p301_p4 = pnand %p299_p2, %p285_p3  ;;  %p307_p5 = scmp.lt.s32.totalorder %s305_s22, %s298_s15 }
  0x25   : > { %p302_p12 = pneg %p301_p4  ;;  %p308_p8 = por %p307_p5, %p306_p11 }
  0x27   : > { %p309_p9 = pnand %p308_p8, %p302_p12 }
  0x29   : > { %312 = shalt.err (!%p309_p9)
}
  0x2a   : > { %243 = dma.hbm_to_vmem [thread:$0]  (!%p466_p13), %s462_s27, 128, %s470_s29, %s90_s3  }
  0x2b   : > { %p569_p0 = scmp.lt.s32.totalorder %s379_s12, 3  ;;  %p570_p1 = scmp.ge.s32.totalorder %s379_s12, 1 }
  0x2d   : > { %p106_p3 = pnand %p570_p1, %p569_p0 }
  0x2e   : > { %s504_s23 = sand.u32 (!%p106_p3), 1, %s371_s10  }
  0x2f   : > { %109 = sbr.rel (%p106_p3) target bundleno = 81 (0x51), region = 24  ;;  %s229_s24 = sshll.u32 (!%p106_p3), %s504_s23, 3 }
  0x30   : > { %s112_s25 = scalar_lea.sflag (!%p106_p3), [#allocation5], %s504_s23  ;;  %s115_s26 = scalar_lea.vmem (!%p106_p3), [#allocation4], %s229_s24 }
  0x36   : > { %358 = dma.done.wait (%p442_p6), %s112_s25, 128  }
  0x37   : > { %360 = vsyncadd (%p442_p6), %s112_s25, 4294967168  ;;  %s133_s27 = scalar_lea.vmem [#allocation7], %s229_s24  ;;  %s233_s29 = sshll.u32 %s420_s0, 7  ;;  %v134_v0 = vld [vmem:[%s115_s26] sm:$0xff]  ;;  %v382_v1 = vmov 0.0  }
  0x38   : > { %s153_s28 = sshll.u32 %s133_s27, 4  ;;  %vm135_vm0 = vcmp.gt.f32.partialorder %v134_v0, 0.0  ;;  %s518_s4 = scalar_lea.hbm %s562_s2, %s233_s29  ;;  %s513_s28 = int_to_ptr.vmem [resolvable:$true] %s153_s28 }
  0x39   : > { %v231_v2 = vsel %vm135_vm0, 1.0, %v382_v1  ;;  %s140_s19 = scalar_lea.sflag [#allocation6], %s504_s23  ;;  %s313_s5 = scalar_lea.vmem %s513_s28, 128 }
  0x3a   : > { %138 = vst [vmem:[%s133_s27] sm:$0xff] %v231_v2  ;;  %p314_p6 = scmp.ne.s32.totalorder %s513_s28, %s313_s5  ;;  %p571_p11 = scmp.ne.s32.totalorder %s566_s20, 0 }
  0x3b   : > { %s383_s0 = smov [#allocation7]  }
  0x3c   : > { %p315_p12 = pnand %p314_p6, %p571_p11  ;;  %s317_s6 = sshll.u32 %s383_s0, 4  ;;  %s318_s6 = int_to_ptr.vmem [resolvable:$false] %s317_s6 }
  0x3d   : > { %s319_s7 = scalar_lea.vmem %s318_s6, 256  ;;  %p320_p7 = scmp.lt.s32.totalorder %s513_s28, %s318_s6 }
  0x3e   : > { %p316_p13 = pneg %p315_p12  ;;  %p321_p10 = scmp.lt.s32.totalorder %s319_s7, %s313_s5 }
  0x40   : > { %p322_p2 = por %p321_p10, %p320_p7 }
  0x42   : > { %p323_p4 = pnand %p322_p2, %p316_p13 }
  0x44   : > { %326 = shalt.err (!%p323_p4)
}
  0x45   : > { %s327_s8 = scalar_lea.hbm %s518_s4, 128  ;;  %s331_s16 = scalar_lea.hbm %s562_s2, 256 }
  0x46   : > { %p328_p5 = scmp.ne.s32.totalorder %s518_s4, %s327_s8  ;;  %p332_p0 = scmp.lt.u32.totalorder %s518_s4, %s562_s2 }
  0x47   : > { %p333_p1 = scmp.lt.u32.totalorder %s331_s16, %s327_s8  ;;  %p335_p6 = scmp.lt.u32.totalorder %s327_s8, %s518_s4 }
  0x48   : > { %p329_p8 = pnand %p328_p5, %p571_p11 }
  0x49   : > { %p334_p3 = por %p333_p1, %p332_p0 }
  0x4a   : > { %p330_p9 = pneg %p329_p8 }
  0x4b   : > { %p336_p12 = por %p335_p6, %p334_p3 }
  0x4d   : > { %p337_p13 = pnand %p336_p12, %p330_p9 }
  0x4f   : > { %340 = shalt.err (!%p337_p13)
}
  0x50   : > { %238 = dma.vmem_to_hbm [thread:$0]  (%p571_p11), %s513_s28, 128, %s518_s4, %s140_s19  }
  0x51 PF: > { %s165_s23 = sand.u32 1, %s367_s9   ;;  %p572_p7 = scmp.ne.s32.totalorder %s567_s21, 0 }
  0x52   : > { %p573_p10 = scmp.ge.s32.totalorder %s379_s12, 2  ;;  %s166_s24 = scalar_lea.sflag [#allocation6], %s165_s23 }
  0x54   : > { %p245_p2 = pnand %p573_p10, %p572_p7 }
  0x56   : > { %362 = dma.done.wait (!%p245_p2), %s166_s24, 128  }
  0x57   : > { %364 = vsyncadd (!%p245_p2), %s166_s24, 4294967168  ;;  %p16_p4 = scmp.ge.s32.totalorder %s424_s14, 4   ;;  %s574_s9 = smov %s371_s10 }
  0x58   : > { %s575_s10 = smov %s375_s11  ;;  %s576_s11 = smov %s436_s17 }
  0x59   : > { %s577_s12 = smov %s424_s14  ;;  %18 = sbr.rel (!%p16_p4) target bundleno = 5 (0x5), region = 69 }
  0x60   :  { %171 = vsyncpa [#allocation5], 1 }
  0x61   :  { %173 = vsyncpa [#allocation5 + $0x1], 1 }
  0x62   :  { %174 = vsyncpa [#allocation6], 1 }
  0x63   :  { %176 = vsyncpa [#allocation6 + $0x1], 1 }

</bundles_post_ra>
